<compile_context>
chip_gen: v7x
topology: tpu7x:2x2x1
jax: 0.10.0
libtpu: 0.0.40
codegen_flags: <defaults>
</compile_context>

<pallas_src>
import functools

import jax
import jax.numpy as jnp
from jax import lax
from jax.experimental import pallas as pl
from jax.experimental.pallas import tpu as pltpu


def _round_up(x, m):
    return ((x + m - 1) // m) * m


def _contrastive_loss_kernel(q_ref, k_ref, m_ref, pcnt_ref, ncnt_ref, out_ref,
                             psum_ref, nsum_ref, *, inv_t):
    j = pl.program_id(1)
    n_col = pl.num_programs(1)

    @pl.when(j == 0)
    def _init():
        psum_ref[...] = jnp.zeros_like(psum_ref)
        nsum_ref[...] = jnp.zeros_like(nsum_ref)

    # q is already normalized AND pre-scaled by 1/T; k is normalized.
    # [bq, bk] = q @ k^T, contracting last dims (no XLU transpose).
    sim = lax.dot_general(q_ref[...], k_ref[...], (((1,), (1,)), ((), ())),
                          preferred_element_type=jnp.float32)
    # Constant shift by 1/T (the max of sim/T); the final ratio is invariant,
    # but exp stays <= ~1 even for very small temperatures.
    e = jnp.exp(sim - inv_t)

    # Combined int8 mask: m = pos + 2*neg (values 0..3, overlap-safe).
    m = m_ref[...].astype(jnp.float32)
    neg = jnp.where(m >= 2.0, 1.0, 0.0)
    pos = m - 2.0 * neg

    psum_ref[...] += jnp.sum(e * pos, axis=-1, keepdims=True)
    nsum_ref[...] += jnp.sum(e * neg, axis=-1, keepdims=True)

    @pl.when(j == n_col - 1)
    def _finalize():
        pc = pcnt_ref[...]
        nc = ncnt_ref[...]
        valid = jnp.logical_and(pc > 0.0, nc > 0.0)
        each = psum_ref[...] / jnp.maximum(pc, 1.0)        # mean over positives
        denom = nsum_ref[...] + each
        # Guard invalid rows before the logs so no inf/NaN is ever produced.
        safe_each = jnp.where(valid, each, 1.0)
        safe_denom = jnp.where(valid, denom, 1.0)
        row_loss = jnp.log(safe_denom) - jnp.log(safe_each)  # = -log(each/denom)
        out_ref[...] = jnp.where(valid, row_loss, 0.0)


def contrastive_loss(embeddings, positives_mask, negatives_mask, temperature=0.5,
                     block_q=256, block_k=1024, use_bf16_matmul=False,
                     vmem_budget_bytes=24 * (1 << 20)):
    """embeddings: [B, D] float; masks: [B, B] bool. Returns scalar float32 loss."""
    B, D = embeddings.shape
    assert block_q % 8 == 0 and block_k % 128 == 0
    assert block_q & (block_q - 1) == 0 and block_k & (block_k - 1) == 0, \
        "block sizes must be powers of two"

    inv_t = float(1.0 / temperature)

    if embeddings.dtype == jnp.bfloat16 or use_bf16_matmul:
        dot_dtype = jnp.bfloat16
    else:
        dot_dtype = jnp.float32
    itemsize = jnp.dtype(dot_dtype).itemsize

    # ---- Hoisted preprocessing (done once, by XLA, O(B*D) / O(B^2) int8) ----
    # F.normalize(emb, p=2, dim=1) with eps=1e-12; fold 1/T into the query side
    # so the matmul already yields sim/T.
    emb = embeddings.astype(jnp.float32)
    inv_norm = lax.rsqrt(
        jnp.maximum(jnp.sum(emb * emb, axis=-1, keepdims=True), 1e-24))
    emb_n = emb * inv_norm
    qn = (emb_n * inv_t).astype(dot_dtype)
    kn = emb_n.astype(dot_dtype)

    # Single combined int8 mask stream (overlap-safe encoding).
    comb = positives_mask.astype(jnp.int8) + 2 * negatives_mask.astype(jnp.int8)
    pcnt = jnp.sum(positives_mask, axis=-1, dtype=jnp.float32)[:, None]
    ncnt = jnp.sum(negatives_mask, axis=-1, dtype=jnp.float32)[:, None]

    # ---- Tile sizing ----
    bk = block_k
    # Shrink the column tile (powers of two, >= 128) for small batches.
    while bk > 128 and bk // 2 >= _round_up(B, 128):
        bk //= 2
    bq = block_q

    def _vmem_est(bq_, bk_):
        # double-buffered key + mask streams, resident query tile, small vectors
        return (2 * bk_ * D * itemsize + 2 * bq_ * bk_
                + bq_ * D * itemsize + 8 * bq_ * 4)

    # Stay within a conservative budget (v7x has only 64 MiB VMEM per core).
    while bk > 128 and _vmem_est(bq, bk) > vmem_budget_bytes:
        bk //= 2
    while bq > 128 and _vmem_est(bq, bk) > vmem_budget_bytes:
        bq //= 2

    B_pad = _round_up(B, bk)
    bq = min(bq, B_pad)
    while B_pad % bq != 0:
        bq //= 2
    # Expose >= 2 row tiles so the "parallel" axis can feed both TensorCores
    # on 2-TC chips (v7x); harmless elsewhere.
    if B_pad // bq < 2:
        cand = B_pad // 2
        cand -= cand % 8
        if cand >= 8 and B_pad % cand == 0:
            bq = cand

    pad_r = B_pad - B
    # Zero-padded rows have zero masks/counts -> they contribute exactly 0.
    qn_p = jnp.pad(qn, ((0, pad_r), (0, 0)))
    kn_p = jnp.pad(kn, ((0, pad_r), (0, 0)))
    comb_p = jnp.pad(comb, ((0, pad_r), (0, pad_r)))
    pcnt_p = jnp.pad(pcnt, ((0, pad_r), (0, 0)))
    ncnt_p = jnp.pad(ncnt, ((0, pad_r), (0, 0)))

    kernel = functools.partial(_contrastive_loss_kernel, inv_t=inv_t)
    grid = (B_pad // bq, B_pad // bk)

    row_losses = pl.pallas_call(
        kernel,
        out_shape=jax.ShapeDtypeStruct((B_pad, 1), jnp.float32),
        grid_spec=pltpu.PrefetchScalarGridSpec(
            num_scalar_prefetch=0,
            grid=grid,
            in_specs=[
                pl.BlockSpec((bq, D), lambda i, j: (i, 0)),    # normalized q * 1/T (resident per i)
                pl.BlockSpec((bk, D), lambda i, j: (j, 0)),    # normalized k (streamed)
                pl.BlockSpec((bq, bk), lambda i, j: (i, j)),   # combined int8 mask tile
                pl.BlockSpec((bq, 1), lambda i, j: (i, 0)),    # per-row positive counts
                pl.BlockSpec((bq, 1), lambda i, j: (i, 0)),    # per-row negative counts
            ],
            out_specs=pl.BlockSpec((bq, 1), lambda i, j: (i, 0)),
            scratch_shapes=[
                pltpu.VMEM((bq, 1), jnp.float32),   # pos_sum
                pltpu.VMEM((bq, 1), jnp.float32),   # neg_sum
            ],
        ),
        compiler_params=pltpu.CompilerParams(
            dimension_semantics=("parallel", "arbitrary")),
    )(qn_p, kn_p, comb_p, pcnt_p, ncnt_p)

    # Padded rows contribute 0; divide by the ORIGINAL batch size (module semantics).
    return jnp.sum(row_losses) / B


def _reference_loss(embeddings, positives_mask, negatives_mask, temperature=0.5):
    # Pure-JAX reference mirroring the PyTorch loop semantics.
    emb = embeddings.astype(jnp.float32)
    n = jnp.sqrt(jnp.sum(emb * emb, axis=-1, keepdims=True))
    emb_n = emb / jnp.maximum(n, 1e-12)
    sim = emb_n @ emb_n.T
    e = jnp.exp(sim / temperature)
    pos = positives_mask.astype(jnp.float32)
    neg = negatives_mask.astype(jnp.float32)
    pos_cnt = pos.sum(-1)
    neg_cnt = neg.sum(-1)
    each = (e * pos).sum(-1) / jnp.maximum(pos_cnt, 1.0)
    neg_sum = (e * neg).sum(-1)
    row_loss = -jnp.log(each / (neg_sum + each))
    row_loss = jnp.where((pos_cnt > 0) & (neg_cnt > 0), row_loss, 0.0)
    return row_loss.sum() / sim.shape[0]


def _make_masks(key, B, num_classes):
    labels = jax.random.randint(key, (B,), 0, num_classes)
    same = labels[:, None] == labels[None, :]
    eye = jnp.eye(B, dtype=bool)
    positives_mask = jnp.logical_and(same, jnp.logical_not(eye))
    negatives_mask = jnp.logical_not(same)
    return positives_mask, negatives_mask


if __name__ == "__main__":
    key = jax.random.PRNGKey(0)

    # Case 1: tiny batch (single column tile; row tile split for 2-TC chips).
    key, k_emb, k_lbl = jax.random.split(key, 3)
    B, D = 8, 32
    emb = jax.random.normal(k_emb, (B, D), dtype=jnp.float32)
    pos_m, neg_m = _make_masks(k_lbl, B, num_classes=3)
    loss = jax.block_until_ready(contrastive_loss(emb, pos_m, neg_m, temperature=0.5))
    ref = _reference_loss(emb, pos_m, neg_m, temperature=0.5)
    assert jnp.allclose(loss, ref, rtol=5e-5, atol=5e-6), ("case1", loss, ref)

    # Case 2: non-multiple batch with forced multi-tile grid (exercises the
    # column-axis accumulation, padding, and per-row-tile outputs).
    key, k_emb, k_lbl = jax.random.split(key, 3)
    B, D = 200, 48
    emb = jax.random.normal(k_emb, (B, D), dtype=jnp.float32)
    pos_m, neg_m = _make_masks(k_lbl, B, num_classes=7)
    loss = jax.block_until_ready(
        contrastive_loss(emb, pos_m, neg_m, temperature=0.5, block_q=128, block_k=128))
    ref = _reference_loss(emb, pos_m, neg_m, temperature=0.5)
    assert jnp.allclose(loss, ref, rtol=5e-5, atol=5e-6), ("case2", loss, ref)

    print("KERNEL_OK")
</pallas_src>

<mosaic_0001>
module attributes {stable_mosaic.version = 11 : i64} {
  func.func @_contrastive_loss_kernel(%arg0: i32, %arg1: i32, %arg2: memref<64x32xf32, #tpu.memory_space<vmem>>, %arg3: memref<128x32xf32, #tpu.memory_space<vmem>>, %arg4: memref<64x128xi8, #tpu.memory_space<vmem>>, %arg5: memref<64x1xf32, #tpu.memory_space<vmem>>, %arg6: memref<64x1xf32, #tpu.memory_space<vmem>>, %arg7: memref<64x1xf32, #tpu.memory_space<vmem>>, %arg8: memref<64x1xf32, #tpu.memory_space<vmem>>, %arg9: memref<64x1xf32, #tpu.memory_space<vmem>>) attributes {dimension_semantics = [#tpu.dimension_semantics<parallel>, #tpu.dimension_semantics<arbitrary>], iteration_bounds = array<i64: 2, 1>, scalar_prefetch = 0 : i64, scratch_operands = 2 : i64, tpu.core_type = #tpu.core_type<tc>, window_params = [{transform_indices = @transform_0, window_bounds = array<i64: 64, 32>}, {transform_indices = @transform_1, window_bounds = array<i64: 128, 32>}, {transform_indices = @transform_2, window_bounds = array<i64: 64, 128>}, {transform_indices = @transform_3, window_bounds = array<i64: 64, 1>}, {transform_indices = @transform_4, window_bounds = array<i64: 64, 1>}, {transform_indices = @transform_5, window_bounds = array<i64: 64, 1>}]} {
    %c0_i32 = arith.constant 0 : i32
    %0 = arith.cmpi eq, %arg1, %c0_i32 : i32
    %1 = arith.extui %0 : i1 to i32
    %c0_i32_0 = arith.constant 0 : i32
    %2 = arith.cmpi ne, %1, %c0_i32_0 : i32
    scf.if %2 {
      %cst_23 = arith.constant 0.000000e+00 : f32
      %34 = vector.broadcast %cst_23 : f32 to vector<64x1xf32>
      %c0_24 = arith.constant 0 : index
      %c0_25 = arith.constant 0 : index
      %35 = vector.load %arg8[%c0_24, %c0_25] : memref<64x1xf32, #tpu.memory_space<vmem>>, vector<64x1xf32>
      tpu.vector_store %arg8[%c0_24, %c0_25], %34 {strides = array<i32>} : memref<64x1xf32, #tpu.memory_space<vmem>>, vector<64x1xf32>,
      %cst_26 = arith.constant 0.000000e+00 : f32
      %36 = vector.broadcast %cst_26 : f32 to vector<64x1xf32>
      %c0_27 = arith.constant 0 : index
      %c0_28 = arith.constant 0 : index
      %37 = vector.load %arg9[%c0_27, %c0_28] : memref<64x1xf32, #tpu.memory_space<vmem>>, vector<64x1xf32>
      tpu.vector_store %arg9[%c0_27, %c0_28], %36 {strides = array<i32>} : memref<64x1xf32, #tpu.memory_space<vmem>>, vector<64x1xf32>,
    } else {
    }
    %c0 = arith.constant 0 : index
    %c0_1 = arith.constant 0 : index
    %3 = vector.load %arg2[%c0, %c0_1] : memref<64x32xf32, #tpu.memory_space<vmem>>, vector<64x32xf32>
    %c0_2 = arith.constant 0 : index
    %c0_3 = arith.constant 0 : index
    %4 = vector.load %arg3[%c0_2, %c0_3] : memref<128x32xf32, #tpu.memory_space<vmem>>, vector<128x32xf32>
    %cst = arith.constant dense<0.000000e+00> : vector<64x128xf32>
    %5 = tpu.matmul %3, %4, %cst {dimension_numbers = #tpu.dot_dimension_numbers<[1], [1], [0], [0], [0, 0, 1, 0], [], []>} : vector<64x32xf32>, vector<128x32xf32>, vector<64x128xf32> -> vector<64x128xf32>
    %cst_4 = arith.constant 2.000000e+00 : f32
    %6 = vector.broadcast %cst_4 : f32 to vector<64x128xf32>
    %7 = arith.subf %5, %6 : vector<64x128xf32>
    %8 = math.exp %7 : vector<64x128xf32>
    %c0_5 = arith.constant 0 : index
    %c0_6 = arith.constant 0 : index
    %9 = vector.load %arg4[%c0_5, %c0_6] : memref<64x128xi8, #tpu.memory_space<vmem>>, vector<64x128xi8>
    %10 = arith.sitofp %9 : vector<64x128xi8> to vector<64x128xf32>
    %cst_7 = arith.constant 2.000000e+00 : f32
    %11 = vector.broadcast %cst_7 : f32 to vector<64x128xf32>
    %12 = arith.cmpf oge, %10, %11 : vector<64x128xf32>
    %cst_8 = arith.constant 1.000000e+00 : f32
    %cst_9 = arith.constant 0.000000e+00 : f32
    %13 = vector.broadcast %cst_8 : f32 to vector<64x128xf32>
    %14 = vector.broadcast %cst_9 : f32 to vector<64x128xf32>
    %15 = arith.select %12, %13, %14 : vector<64x128xi1>, vector<64x128xf32>
    %cst_10 = arith.constant 2.000000e+00 : f32
    %16 = vector.broadcast %cst_10 : f32 to vector<64x128xf32>
    %17 = arith.mulf %16, %15 : vector<64x128xf32>
    %18 = arith.subf %10, %17 : vector<64x128xf32>
    %c0_11 = arith.constant 0 : index
    %c0_12 = arith.constant 0 : index
    %19 = vector.load %arg8[%c0_11, %c0_12] : memref<64x1xf32, #tpu.memory_space<vmem>>, vector<64x1xf32>
    %20 = arith.mulf %8, %18 : vector<64x128xf32>
    %cst_13 = arith.constant dense<0.000000e+00> : vector<64xf32>
    %21 = vector.multi_reduction <add>, %20, %cst_13 [1] : vector<64x128xf32> to vector<64xf32>
    %22 = vector.shape_cast %21 : vector<64xf32> to vector<64x1xf32>
    %23 = arith.addf %19, %22 : vector<64x1xf32>
    %c0_14 = arith.constant 0 : index
    %c0_15 = arith.constant 0 : index
    %24 = vector.load %arg8[%c0_14, %c0_15] : memref<64x1xf32, #tpu.memory_space<vmem>>, vector<64x1xf32>
    tpu.vector_store %arg8[%c0_14, %c0_15], %23 {strides = array<i32>} : memref<64x1xf32, #tpu.memory_space<vmem>>, vector<64x1xf32>,
    %c0_16 = arith.constant 0 : index
    %c0_17 = arith.constant 0 : index
    %25 = vector.load %arg9[%c0_16, %c0_17] : memref<64x1xf32, #tpu.memory_space<vmem>>, vector<64x1xf32>
    %26 = arith.mulf %8, %15 : vector<64x128xf32>
    %cst_18 = arith.constant dense<0.000000e+00> : vector<64xf32>
    %27 = vector.multi_reduction <add>, %26, %cst_18 [1] : vector<64x128xf32> to vector<64xf32>
    %28 = vector.shape_cast %27 : vector<64xf32> to vector<64x1xf32>
    %29 = arith.addf %25, %28 : vector<64x1xf32>
    %c0_19 = arith.constant 0 : index
    %c0_20 = arith.constant 0 : index
    %30 = vector.load %arg9[%c0_19, %c0_20] : memref<64x1xf32, #tpu.memory_space<vmem>>, vector<64x1xf32>
    tpu.vector_store %arg9[%c0_19, %c0_20], %29 {strides = array<i32>} : memref<64x1xf32, #tpu.memory_space<vmem>>, vector<64x1xf32>,
    %c0_i32_21 = arith.constant 0 : i32
    %31 = arith.cmpi eq, %arg1, %c0_i32_21 : i32
    %32 = arith.extui %31 : i1 to i32
    %c0_i32_22 = arith.constant 0 : i32
    %33 = arith.cmpi ne, %32, %c0_i32_22 : i32
    scf.if %33 {
      %c0_23 = arith.constant 0 : index
      %c0_24 = arith.constant 0 : index
      %34 = vector.load %arg5[%c0_23, %c0_24] : memref<64x1xf32, #tpu.memory_space<vmem>>, vector<64x1xf32>
      %c0_25 = arith.constant 0 : index
      %c0_26 = arith.constant 0 : index
      %35 = vector.load %arg6[%c0_25, %c0_26] : memref<64x1xf32, #tpu.memory_space<vmem>>, vector<64x1xf32>
      %cst_27 = arith.constant 0.000000e+00 : f32
      %36 = vector.broadcast %cst_27 : f32 to vector<64x1xf32>
      %37 = arith.cmpf ogt, %34, %36 : vector<64x1xf32>
      %cst_28 = arith.constant 0.000000e+00 : f32
      %38 = vector.broadcast %cst_28 : f32 to vector<64x1xf32>
      %39 = arith.cmpf ogt, %35, %38 : vector<64x1xf32>
      %40 = arith.andi %37, %39 : vector<64x1xi1>
      %c0_29 = arith.constant 0 : index
      %c0_30 = arith.constant 0 : index
      %41 = vector.load %arg8[%c0_29, %c0_30] : memref<64x1xf32, #tpu.memory_space<vmem>>, vector<64x1xf32>
      %cst_31 = arith.constant 1.000000e+00 : f32
      %42 = vector.broadcast %cst_31 : f32 to vector<64x1xf32>
      %43 = arith.maximumf %34, %42 : vector<64x1xf32>
      %44 = arith.divf %41, %43 : vector<64x1xf32>
      %c0_32 = arith.constant 0 : index
      %c0_33 = arith.constant 0 : index
      %45 = vector.load %arg9[%c0_32, %c0_33] : memref<64x1xf32, #tpu.memory_space<vmem>>, vector<64x1xf32>
      %46 = arith.addf %45, %44 : vector<64x1xf32>
      %cst_34 = arith.constant 1.000000e+00 : f32
      %47 = vector.broadcast %cst_34 : f32 to vector<64x1xf32>
      %48 = arith.select %40, %44, %47 : vector<64x1xi1>, vector<64x1xf32>
      %cst_35 = arith.constant 1.000000e+00 : f32
      %49 = vector.broadcast %cst_35 : f32 to vector<64x1xf32>
      %50 = arith.select %40, %46, %49 : vector<64x1xi1>, vector<64x1xf32>
      %51 = math.log %50 : vector<64x1xf32>
      %52 = math.log %48 : vector<64x1xf32>
      %53 = arith.subf %51, %52 : vector<64x1xf32>
      %cst_36 = arith.constant 0.000000e+00 : f32
      %54 = vector.broadcast %cst_36 : f32 to vector<64x1xf32>
      %55 = arith.select %40, %53, %54 : vector<64x1xi1>, vector<64x1xf32>
      %c0_37 = arith.constant 0 : index
      %c0_38 = arith.constant 0 : index
      %56 = vector.load %arg7[%c0_37, %c0_38] : memref<64x1xf32, #tpu.memory_space<vmem>>, vector<64x1xf32>
      tpu.vector_store %arg7[%c0_37, %c0_38], %55 {strides = array<i32>} : memref<64x1xf32, #tpu.memory_space<vmem>>, vector<64x1xf32>,
    } else {
    }
    return
  }
  func.func @transform_0(%arg0: i32, %arg1: i32) -> (i32, i32) {
    %c0_i32 = arith.constant 0 : i32
    %c0_i32_0 = arith.constant 0 : i32
    return %arg0, %c0_i32 : i32, i32
  }
  func.func @transform_1(%arg0: i32, %arg1: i32) -> (i32, i32) {
    %c0_i32 = arith.constant 0 : i32
    %c0_i32_0 = arith.constant 0 : i32
    return %arg1, %c0_i32 : i32, i32
  }
  func.func @transform_2(%arg0: i32, %arg1: i32) -> (i32, i32) {
    %c0_i32 = arith.constant 0 : i32
    return %arg0, %arg1 : i32, i32
  }
  func.func @transform_3(%arg0: i32, %arg1: i32) -> (i32, i32) {
    %c0_i32 = arith.constant 0 : i32
    %c0_i32_0 = arith.constant 0 : i32
    return %arg0, %c0_i32 : i32, i32
  }
  func.func @transform_4(%arg0: i32, %arg1: i32) -> (i32, i32) {
    %c0_i32 = arith.constant 0 : i32
    %c0_i32_0 = arith.constant 0 : i32
    return %arg0, %c0_i32 : i32, i32
  }
  func.func @transform_5(%arg0: i32, %arg1: i32) -> (i32, i32) {
    %c0_i32 = arith.constant 0 : i32
    %c0_i32_0 = arith.constant 0 : i32
    return %arg0, %c0_i32 : i32, i32
  }
}

</mosaic_0001>

<bundles_post_ra>
// kernel: tpu_custom_call.1
= control target key start
LH: loop header
LB: loop body
LE: loop exit
PB: predicated region body
PF: predicated region fallthrough
CT: control target
= control target key end

     0   :  { %s1341_s18 = smov 0   ;;  %s1343_s19 = smov 0   ;;  %s1791_s0 = inlined_call_operand.vmem [shape: f32[128,32], index: 0, kind: input, shape index: {}]   ;;  %s1792_s1 = inlined_call_operand.vmem [shape: f32[128,32], index: 1, kind: input, shape index: {}]   ;;  %s1793_s2 = inlined_call_operand.vmem [shape: s8[128,128], index: 2, kind: input, shape index: {}]   ;;  %s1794_s3 = inlined_call_operand.vmem [shape: f32[128,1], index: 3, kind: input, shape index: {}]   ;;  %s1795_s4 = inlined_call_operand.vmem [shape: f32[128,1], index: 4, kind: input, shape index: {}]   ;;  %s1796_s5 = inlined_call_operand.vmem [shape: f32[128,1], index: 5, kind: output, shape index: {}]  }
   0x1   :  { %s1345_s20 = smov 0  }
   0x2 LB: > { %s27_s21 = sadd.s32 1, %s1304_s19  ;;  %p1020_p0 = scmp.ge.s32.totalorder %s1308_s20, 1  ;;  %s1308_s20 = sphi %s1345_s20, %s15_s20   ;;  %s1304_s19 = sphi %s1343_s19, %s1816_s19   ;;  %s1300_s18 = sphi %s1341_s18, %s1815_s18  }
   0x3   : > { %p29_p1 = scmp.ge.s32.totalorder %s27_s21, 2  ;;  %p249_p2 = scmp.lt.s32.totalorder %s1308_s20, 3 }
   0x5   : > { %s1818_s21 = smov (%p29_p1, %s27_s21), 0  ;;  %p250_p3 = pnand %p1020_p0, %p249_p2 }
   0x6   : > { %v368_v0 = vld [vmem:[%s1792_s1] sm:$0xff] (!%p250_p3)  ;;  %v369_v1 = vld [vmem:[%s1792_s1 + $0x8] sm:$0xff] (!%p250_p3)  ;;  %vm384_vm0 = vcmask (!%p250_p3), 261120   ;;  %v370_v2 = vld [vmem:[%s1792_s1 + $0x10] sm:$0xff] (!%p250_p3)  ;;  %s1021_s28 = sshll.u32 (!%p250_p3), %s1300_s18, 3  ;;  %vm343_vm2 = vcmask (!%p250_p3), 7168  }
   0x7   : > { %253 = sbr.rel (%p250_p3) target bundleno = 503 (0x1f7), region = 40  ;;  %v1133_v3 = vpack.c.bf16 (!%p250_p3), %v369_v1, %v368_v0  ;;  %vm1373_vm1 = vmpackc.low (!%p250_p3), %vm384_vm0, %vm384_vm0  ;;  %v371_v5 = vld [vmem:[%s1792_s1 + $0x18] sm:$0xff] (!%p250_p3)  ;;  %p301_p4 = scmp.lt.s32.totalorder (!%p250_p3), %s1021_s28, 15  ;;  %v372_v7 = vld [vmem:[%s1792_s1 + $0x20] sm:$0xff] (!%p250_p3)  ;;  %v1310_v33 = vmov (!%p250_p3), 0.0  }
   0x8   : > { %v1139_v6 = vpack.c.bf16 (!%p250_p3), %v371_v5, %v370_v2  ;;  %v373_v8 = vld [vmem:[%s1792_s1 + $0x28] sm:$0xff] (!%p250_p3)  ;;  %v374_v12 = vld [vmem:[%s1792_s1 + $0x30] sm:$0xff] (!%p250_p3)  ;;  %v375_v13 = vld [vmem:[%s1792_s1 + $0x38] sm:$0xff] (!%p250_p3)  ;;  %349 = vst.msk [vmem:[#allocation2 + $0x28] sm:$0xff] (!%p250_p3), %vm343_vm2, %v1310_v33 }
   0x9   : > { %1135 = vmatprep.subr.msk.bf16.mxu0 (!%p250_p3), %vm1373_vm1, %v1133_v3  ;;  %1181 = vmatprep.subr.msk.bf16.mxu1 (!%p250_p3), %vm1373_vm1, %v1133_v3  ;;  %v1145_v10 = vpack.c.bf16 (!%p250_p3), %v373_v8, %v372_v7  ;;  %v1151_v14 = vpack.c.bf16 (!%p250_p3), %v375_v13, %v374_v12  ;;  %v376_v15 = vld [vmem:[%s1792_s1 + $0x40] sm:$0xff] (!%p250_p3)  ;;  %v377_v16 = vld [vmem:[%s1792_s1 + $0x48] sm:$0xff] (!%p250_p3)  ;;  %v378_v18 = vld [vmem:[%s1792_s1 + $0x50] sm:$0xff] (!%p250_p3)  ;;  %344 = vst.msk [vmem:[#allocation2] sm:$0xff] (!%p250_p3), %vm343_vm2, %v1310_v33 }
   0xa   : > { %1138 = vmatpush3.bf16.xpose.msk.msra.mxu0 (!%p250_p3), %vm1373_vm1, %v1133_v3  ;;  %1189 = vmatpush3.bf16.xpose.msk.msra.mxu1 (!%p250_p3), %vm1373_vm1, %v1133_v3  ;;  %v1157_v17 = vpack.c.bf16 (!%p250_p3), %v377_v16, %v376_v15  ;;  %v379_v19 = vld [vmem:[%s1792_s1 + $0x58] sm:$0xff] (!%p250_p3)  ;;  %v380_v21 = vld [vmem:[%s1792_s1 + $0x60] sm:$0xff] (!%p250_p3)  ;;  %v381_v22 = vld [vmem:[%s1792_s1 + $0x68] sm:$0xff] (!%p250_p3)  ;;  %345 = vst.msk [vmem:[#allocation2 + $0x8] sm:$0xff] (!%p250_p3), %vm343_vm2, %v1310_v33 }
   0xb   : > { %1141 = vmatprep.subr.msk.bf16.mxu0 (!%p250_p3), %vm1373_vm1, %v1139_v6  ;;  %1182 = vmatprep.subr.msk.bf16.mxu1 (!%p250_p3), %vm1373_vm1, %v1139_v6  ;;  %v1163_v20 = vpack.c.bf16 (!%p250_p3), %v379_v19, %v378_v18  ;;  %v1169_v23 = vpack.c.bf16 (!%p250_p3), %v381_v22, %v380_v21  ;;  %v382_v24 = vld [vmem:[%s1792_s1 + $0x70] sm:$0xff] (!%p250_p3)  ;;  %v383_v25 = vld [vmem:[%s1792_s1 + $0x78] sm:$0xff] (!%p250_p3)  ;;  %346 = vst.msk [vmem:[#allocation2 + $0x10] sm:$0xff] (!%p250_p3), %vm343_vm2, %v1310_v33  ;;  %347 = vst.msk [vmem:[#allocation2 + $0x18] sm:$0xff] (!%p250_p3), %vm343_vm2, %v1310_v33 }
   0xc   : > { %v1175_v26 = vpack.c.bf16 (!%p250_p3), %v383_v25, %v382_v24  ;;  %348 = vst.msk [vmem:[#allocation2 + $0x20] sm:$0xff] (!%p250_p3), %vm343_vm2, %v1310_v33  ;;  %350 = vst.msk [vmem:[#allocation2 + $0x30] sm:$0xff] (!%p250_p3), %vm343_vm2, %v1310_v33 }
   0xd   : > { %351 = vst.msk [vmem:[#allocation2 + $0x38] sm:$0xff] (!%p250_p3), %vm343_vm2, %v1310_v33  ;;  %352 = vst.msk [vmem:[#allocation3] sm:$0xff] (!%p250_p3), %vm343_vm2, %v1310_v33 }
   0xe   : > { %s1820_s28 = smov (!%p301_p4, %s1021_s28), 15  ;;  %353 = vst.msk [vmem:[#allocation3 + $0x8] sm:$0xff] %vm343_vm2, %v1310_v33  ;;  %354 = vst.msk [vmem:[#allocation3 + $0x10] sm:$0xff] %vm343_vm2, %v1310_v33 }
   0xf   : > { %s1392_s6 = sshll.u32 %s1820_s28, 3  ;;  %355 = vst.msk [vmem:[#allocation3 + $0x18] sm:$0xff] %vm343_vm2, %v1310_v33  ;;  %356 = vst.msk [vmem:[#allocation3 + $0x20] sm:$0xff] %vm343_vm2, %v1310_v33 }
  0x10   : > { %s1404_s13 = scalar_lea.vmem %s1791_s0, %s1392_s6  ;;  %357 = vst.msk [vmem:[#allocation3 + $0x28] sm:$0xff] %vm343_vm2, %v1310_v33  ;;  %358 = vst.msk [vmem:[#allocation3 + $0x30] sm:$0xff] %vm343_vm2, %v1310_v33  ;;  %s1592_s24 = scalar_lea.vmem %s1794_s3, %s1392_s6 }
  0x11   : > { %v360_v9 = vld [vmem:[%s1404_s13] sm:$0xff]  ;;  %v361_v27 = vld [vmem:[%s1404_s13 + $0x8] sm:$0xff]  ;;  %v362_v29 = vld [vmem:[%s1404_s13 + $0x10] sm:$0xff]  ;;  %359 = vst.msk [vmem:[#allocation3 + $0x38] sm:$0xff] %vm343_vm2, %v1310_v33  ;;  %s1610_s27 = scalar_lea.vmem %s1795_s4, %s1392_s6  ;;  %s1712_s30 = scalar_lea.vmem %s1796_s5, %s1392_s6 }
  0x12   : > { %1121 = vmatprep.mubr.msk.f32.mxu0 %vm384_vm0, %v360_v9  ;;  %1144 = vmatpush3.bf16.xpose.msk.msra.mxu0 %vm1373_vm1, %v1139_v6  ;;  %v364_v11 = vld [vmem:[%s1404_s13 + $0x20] sm:$0xff]  ;;  %v365_v28 = vld [vmem:[%s1404_s13 + $0x28] sm:$0xff]  ;;  %v366_v30 = vld [vmem:[%s1404_s13 + $0x30] sm:$0xff] }
  0x13   : > { %1190 = vmatpush3.bf16.xpose.msk.msra.mxu1 %vm1373_vm1, %v1139_v6  ;;  %1147 = vmatprep.subr.msk.bf16.mxu0 %vm1373_vm1, %v1145_v10  ;;  %v363_v31 = vld [vmem:[%s1404_s13 + $0x18] sm:$0xff] }
  0x14   : > { %1183 = vmatprep.subr.msk.bf16.mxu1 %vm1373_vm1, %v1145_v10  ;;  %1127 = vmatprep.mubr.msk.f32.mxu1 %vm384_vm0, %v364_v11  ;;  %v367_v32 = vld [vmem:[%s1404_s13 + $0x38] sm:$0xff]  ;;  %s1023_s13 = sshll.u32 %s1300_s18, 1 }
  0x15   : > { %p313_p5 = scmp.lt.s32.totalorder %s1023_s13, 3 }
  0x17   : > { %s1822_s13 = smov (!%p313_p5, %s1023_s13), 3 }
  0x18   : > { %s1024_s15 = sshll.u32 %s1822_s13, 3 }
  0x19   : > { %s319_s22 = scalar_lea.vmem %s1793_s2, %s1024_s15 }
  0x1a   : > { %1150 = vmatpush3.bf16.xpose.msk.msra.mxu0 %vm1373_vm1, %v1145_v10  ;;  %v586_v34 = vld [vmem:[%s319_s22] sm:$0xff]  ;;  %v587_v35 = vld [vmem:[%s319_s22 + $0x8] sm:$0xff] }
  0x1b   : > { %1191 = vmatpush3.bf16.xpose.msk.msra.mxu1 %vm1373_vm1, %v1145_v10  ;;  %1153 = vmatprep.subr.msk.bf16.mxu0 %vm1373_vm1, %v1151_v14  ;;  %v589_v36 = vunpack.c.1.s8 %v586_v34  ;;  %v593_v37 = vunpack.c.1.s8 %v587_v35  ;;  %v588_v39 = vunpack.c.0.s8 %v586_v34  ;;  %v592_v40 = vunpack.c.0.s8 %v587_v35 }
  0x1c   : > { %1184 = vmatprep.subr.msk.bf16.mxu1 %vm1373_vm1, %v1151_v14  ;;  %v591_v45 = vunpack.c.3.s8 %v586_v34  ;;  %v590_v46 = vunpack.c.2.s8 %v586_v34  ;;  %v595_v50 = vunpack.c.3.s8 %v587_v35  ;;  %v594_v56 = vunpack.c.2.s8 %v587_v35 }
  0x1d   : > { %v1540_v38 = vcvt.s32.f32 %v589_v36  ;;  %v1542_v41 = vcvt.s32.f32 %v593_v37  ;;  %v1545_v42 = vcvt.s32.f32 %v588_v39  ;;  %v1547_v43 = vcvt.s32.f32 %v592_v40 }
  0x1e   : > { %v1560_v60 = vcvt.s32.f32 %v591_v45  ;;  %v1563_v0 = vcvt.s32.f32 %v590_v46  ;;  %v1565_v5 = vcvt.s32.f32 %v595_v50  ;;  %v1567_v10 = vcvt.s32.f32 %v594_v56 }
  0x1f   : > { %vm605_vm3 = vcmp.ge.f32.partialorder %v1540_v38, 2.0  ;;  %vm609_vm4 = vcmp.ge.f32.partialorder %v1542_v41, 2.0  ;;  %vm604_vm5 = vcmp.ge.f32.partialorder %v1545_v42, 2.0  ;;  %vm608_vm6 = vcmp.ge.f32.partialorder %v1547_v43, 2.0 }
  0x20   : > { %v1551_v44 = vsel %vm605_vm3, 1.0, %v1310_v33  ;;  %v1555_v49 = vsel %vm609_vm4, 1.0, %v1310_v33  ;;  %v612_v59 = vsel %vm604_vm5, 1.0, %v1310_v33  ;;  %v616_v63 = vsel %vm608_vm6, 1.0, %v1310_v33 }
  0x21   : > { %v621_v55 = vmul.f32 2.0, %v1551_v44  ;;  %vm607_vm7 = vcmp.ge.f32.partialorder %v1560_v60, 2.0  ;;  %vm606_vm8 = vcmp.ge.f32.partialorder %v1563_v0, 2.0  ;;  %vm611_vm9 = vcmp.ge.f32.partialorder %v1565_v5, 2.0 }
  0x22   : > { %1156 = vmatpush3.bf16.xpose.msk.msra.mxu0 %vm1373_vm1, %v1151_v14  ;;  %v615_v18 = vsel %vm607_vm7, 1.0, %v1310_v33  ;;  %vm610_vm10 = vcmp.ge.f32.partialorder %v1567_v10, 2.0  ;;  %v620_v19 = vmul.f32 2.0, %v612_v59  ;;  %v624_v21 = vmul.f32 2.0, %v616_v63 }
  0x23   : > { %1192 = vmatpush3.bf16.xpose.msk.msra.mxu1 %vm1373_vm1, %v1151_v14  ;;  %1159 = vmatprep.subr.msk.bf16.mxu0 %vm1373_vm1, %v1157_v17  ;;  %v619_v22 = vsel %vm611_vm9, 1.0, %v1310_v33  ;;  %v623_v24 = vmul.f32 2.0, %v615_v18  ;;  %v618_v25 = vsel %vm610_vm10, 1.0, %v1310_v33 }
  0x24   : > { %1185 = vmatprep.subr.msk.bf16.mxu1 %vm1373_vm1, %v1157_v17 }
  0x25   : > { %v631_v37 = vsub.f32 %v1560_v60, %v623_v24  ;;  %v737_v60 = vld [vmem:[%s1592_s24 + $0x8] sm:$0xff] }
  0x26   : > { %vm753_vm11 = vcmp.gt.f32.partialorder %v737_v60, 0.0 }
  0x2a   : > { %1162 = vmatpush3.bf16.xpose.msk.msra.mxu0 %vm1373_vm1, %v1157_v17 }
  0x2b   : > { %1193 = vmatpush3.bf16.xpose.msk.msra.mxu1 %vm1373_vm1, %v1157_v17  ;;  %1165 = vmatprep.subr.msk.bf16.mxu0 %vm1373_vm1, %v1163_v20  ;;  %v625_v17 = vmul.f32 2.0, %v1555_v49 }
  0x2c   : > { %1186 = vmatprep.subr.msk.bf16.mxu1 %vm1373_vm1, %v1163_v20 }
  0x32   : > { %1168 = vmatpush3.bf16.xpose.msk.msra.mxu0 %vm1373_vm1, %v1163_v20 }
  0x33   : > { %1194 = vmatpush3.bf16.xpose.msk.msra.mxu1 %vm1373_vm1, %v1163_v20  ;;  %1171 = vmatprep.subr.msk.bf16.mxu0 %vm1373_vm1, %v1169_v23  ;;  %v614_v20 = vsel %vm606_vm8, 1.0, %v1310_v33 }
  0x34   : > { %1187 = vmatprep.subr.msk.bf16.mxu1 %vm1373_vm1, %v1169_v23 }
  0x3a   : > { %1174 = vmatpush3.bf16.xpose.msk.msra.mxu0 %vm1373_vm1, %v1169_v23 }
  0x3b   : > { %1195 = vmatpush3.bf16.xpose.msk.msra.mxu1 %vm1373_vm1, %v1169_v23  ;;  %1177 = vmatprep.subr.msk.bf16.mxu0 %vm1373_vm1, %v1175_v26  ;;  %v629_v23 = vsub.f32 %v1540_v38, %v621_v55 }
  0x3c   : > { %1188 = vmatprep.subr.msk.bf16.mxu1 %vm1373_vm1, %v1175_v26 }
  0x42   : > { %1180 = vmatpush3.bf16.xpose.msk.msra.mxu0 %vm1373_vm1, %v1175_v26 }
  0x43   : > { %1196 = vmatpush3.bf16.xpose.msk.msra.mxu1 %vm1373_vm1, %v1175_v26  ;;  %v633_v26 = vsub.f32 %v1542_v41, %v625_v17 }
  0x49   : > { %1122 = vmatmul.mubr.msk.f32.vlgmr.msra.gmra.mrb[0].mxu0 %vm384_vm0, %v361_v27  ;;  %v622_v27 = vmul.f32 2.0, %v614_v20 }
  0x4a   : > { %1128 = vmatmul.mubr.msk.f32.vlgmr.msra.gmra.mrb[0].mxu1 %vm384_vm0, %v365_v28  ;;  %1124 = vmatprep.mubr.msk.f32.mxu0 %vm384_vm0, %v362_v29  ;;  %v628_v28 = vsub.f32 %v1545_v42, %v620_v19  ;;  %v627_v29 = vmul.f32 2.0, %v619_v22  ;;  %v690_v19 = vld [vmem:[#allocation3 + $0x28] sm:$0xff] }
  0x4b   : > { %1130 = vmatprep.mubr.msk.f32.mxu1 %vm384_vm0, %v366_v30  ;;  %v630_v40 = vsub.f32 %v1563_v0, %v622_v27 }
  0x4c   : > { %v635_v46 = vsub.f32 %v1565_v5, %v627_v29  ;;  %v685_v29 = vld [vmem:[#allocation3] sm:$0xff] }
  0x4d   : > { %1125 = vmatmul.mubr.msk.f32.gmra.mrb[2].mxu0 %vm384_vm0, %v363_v31  ;;  %v632_v31 = vsub.f32 %v1547_v43, %v624_v21 }
  0x4e   : > { %1131 = vmatmul.mubr.msk.f32.gmra.mrb[2].mxu1 %vm384_vm0, %v367_v32  ;;  %v626_v32 = vmul.f32 2.0, %v618_v25 }
 0x11c   : > { %v1123_v47 = vpop.f32.mrb[0].mxu0 }
 0x11d   : > { %v1129_v48 = vpop.f32.mrb[0].mxu1  ;;  %v1056_v51 = vadd.f32 -2.0, %v1123_v47  ;;  %v523_v53 = vpop.f32.mrb[1].mxu0 }
 0x11e   : > { %v1060_v52 = vadd.f32 -2.0, %v1129_v48  ;;  %v543_v54 = vpop.f32.mrb[1].mxu1  ;;  %v1055_v57 = vadd.f32 -2.0, %v523_v53 }
 0x11f   : > { %v1059_v58 = vadd.f32 -2.0, %v543_v54  ;;  %v572_v61 = vmul.f32 1.442695, %v1056_v51 }
 0x120   : > { %v580_v62 = vmul.f32 1.442695, %v1060_v52  ;;  %v570_v1 = vmul.f32 1.442695, %v1055_v57  ;;  %v1126_v3 = vpop.f32.mrb[2].mxu0 }
 0x121   : > { %v578_v2 = vmul.f32 1.442695, %v1059_v58  ;;  %v1132_v4 = vpop.f32.mrb[2].mxu1  ;;  %1222 = vpow2.f32 %v572_v61  ;;  %v1058_v6 = vadd.f32 -2.0, %v1126_v3  ;;  %v533_v7 = vpop.f32.mrb[3].mxu0  ;;  %v1596_v61 = vld [vmem:[%s1592_s24 + $0x28] sm:$0xff] }
 0x122   : > { %v1062_v8 = vadd.f32 -2.0, %v1132_v4  ;;  %v553_v9 = vpop.f32.mrb[3].mxu1  ;;  %1224 = vpow2.f32 %v580_v62  ;;  %v1057_v11 = vadd.f32 -2.0, %v533_v7  ;;  %v785_v62 = vmax.f32 %v737_v60, 1.0  ;;  %v1603_v3 = vld [vmem:[%s1592_s24 + $0x20] sm:$0xff] }
 0x123   : > { %v1061_v12 = vadd.f32 -2.0, %v553_v9  ;;  %1226 = vpow2.f32 %v570_v1  ;;  %v576_v13 = vmul.f32 1.442695, %v1058_v6  ;;  %v789_v0 = vmax.f32 %v1596_v61, 1.0  ;;  %v637_v1 = vld [vmem:[#allocation2 + $0x8] sm:$0xff]  ;;  %v636_v9 = vld [vmem:[#allocation2] sm:$0xff] }
 0x124   : > { %v584_v14 = vmul.f32 1.442695, %v1062_v8  ;;  %1228 = vpow2.f32 %v578_v2  ;;  %v574_v15 = vmul.f32 1.442695, %v1057_v11  ;;  %v641_v2 = vld [vmem:[#allocation2 + $0x28] sm:$0xff]  ;;  %vm757_vm14 = vcmp.gt.f32.partialorder %v1596_v61, 0.0 }
 0x125   : > { %v582_v16 = vmul.f32 1.442695, %v1061_v12  ;;  %1230 = vpow2.f32 %v576_v13  ;;  %v686_v11 = vld [vmem:[#allocation3 + $0x8] sm:$0xff]  ;;  %vm756_vm4 = vcmp.gt.f32.partialorder %v1603_v3, 0.0 }
 0x126   : > { %1232 = vpow2.f32 %v574_v15  ;;  %v745_v12 = vld [vmem:[%s1610_s27 + $0x8] sm:$0xff] }
 0x127   : > { %1234 = vpow2.f32 %v584_v14  ;;  %vm761_vm12 = vcmp.gt.f32.partialorder %v745_v12, 0.0 }
 0x128   : > { %1236 = vpow2.f32 %v582_v16  ;;  %v1617_v16 = vld [vmem:[%s1592_s24 + $0x18] sm:$0xff]  ;;  %vm1623_vm13 = vmand %vm753_vm11, %vm761_vm12 }
 0x129   : > { %1238 = vrcp.f32 %v785_v62  ;;  %vm755_vm8 = vcmp.gt.f32.partialorder %v1617_v16, 0.0 }
 0x12a   : > { %1240 = vrcp.f32 %v789_v0 }
 0x12b   : > { %v1223_v30 = vpop.eup %1222 }
 0x12c   : > { %v1225_v34 = vpop.eup %1224  ;;  %v645_v35 = vmul.f32 %v1223_v30, %v629_v23  ;;  %v694_v36 = vmul.f32 %v1223_v30, %v1551_v44  ;;  %v634_v44 = vsub.f32 %v1567_v10, %v626_v32  ;;  %v788_v10 = vmax.f32 %v1603_v3, 1.0 }
 0x12d   : > { %v1227_v38 = vpop.eup %1226  ;;  %v649_v39 = vmul.f32 %v1225_v34, %v633_v26  ;;  %v698_v33 = vmul.f32 %v1225_v34, %v1555_v49  ;;  %v787_v23 = vmax.f32 %v1617_v16, 1.0 }
 0x12e   : > { %v1229_v41 = vpop.eup %1228  ;;  %654 = vadd.xlane.f32.xlu0 %v645_v35  ;;  %v644_v42 = vmul.f32 %v1227_v38, %v628_v28  ;;  %v693_v45 = vmul.f32 %v1227_v38, %v612_v59  ;;  %v639_v35 = vld [vmem:[#allocation2 + $0x18] sm:$0xff]  ;;  %v1635_v38 = vld [vmem:[%s1592_s24 + $0x10] sm:$0xff] }
 0x12f   : > { %v1231_v43 = vpop.eup %1230  ;;  %662 = vadd.xlane.f32.xlu1 %v649_v39  ;;  %v648_v47 = vmul.f32 %v1229_v41, %v632_v31  ;;  %v697_v48 = vmul.f32 %v1229_v41, %v616_v63  ;;  %v1599_v63 = vld [vmem:[%s1592_s24] sm:$0xff]  ;;  %v1628_v31 = vld [vmem:[%s1592_s24 + $0x38] sm:$0xff]  ;;  %v1638_v39 = vld [vmem:[%s1592_s24 + $0x30] sm:$0xff] }
 0x130   : > { %v1233_v50 = vpop.eup %1232  ;;  %v647_v51 = vmul.f32 %v1231_v43, %v631_v37  ;;  %v696_v52 = vmul.f32 %v1231_v43, %v615_v18  ;;  %v784_v4 = vmax.f32 %v1599_v63, 1.0  ;;  %v640_v18 = vld [vmem:[#allocation2 + $0x20] sm:$0xff]  ;;  %vm752_vm0 = vcmp.gt.f32.partialorder %v1599_v63, 0.0  ;;  %v688_v63 = vld [vmem:[#allocation3 + $0x18] sm:$0xff] }
 0x131   : > { %v1235_v53 = vpop.eup %1234  ;;  %v695_v54 = vmul.f32 %v1233_v50, %v614_v20  ;;  %v646_v49 = vmul.f32 %v1233_v50, %v630_v40  ;;  %vm759_vm11 = vcmp.gt.f32.partialorder %v1628_v31, 0.0 }
 0x132   : > { %v1237_v55 = vpop.eup %1236  ;;  %652 = vadd.xlane.f32.xlu0 %v644_v42  ;;  %v651_v56 = vmul.f32 %v1235_v53, %v635_v46  ;;  %v700_v57 = vmul.f32 %v1235_v53, %v619_v22  ;;  %1242 = vrcp.f32 %v784_v4  ;;  %v749_v22 = vld [vmem:[%s1610_s27 + $0x28] sm:$0xff]  ;;  %v791_v46 = vmax.f32 %v1628_v31, 1.0 }
 0x133   : > { %703 = vadd.xlane.f32.xlu1 %v694_v36  ;;  %v650_v58 = vmul.f32 %v1237_v55, %v634_v44  ;;  %v699_v59 = vmul.f32 %v1237_v55, %v618_v25  ;;  %1244 = vrcp.f32 %v788_v10  ;;  %v1239_v20 = vpop.eup %1238  ;;  %v744_v36 = vld [vmem:[%s1610_s27] sm:$0xff]  ;;  %vm765_vm15 = vcmp.gt.f32.partialorder %v749_v22, 0.0 }
 0x134   : > { %v1241_v30 = vpop.eup %1240  ;;  %1246 = vrcp.f32 %v787_v23  ;;  %v689_v44 = vld [vmem:[#allocation3 + $0x20] sm:$0xff]  ;;  %vm760_vm1 = vcmp.gt.f32.partialorder %v744_v36, 0.0  ;;  %vm1648_vm3 = vmand %vm757_vm14, %vm765_vm15  ;;  %v790_v53 = vmax.f32 %v1638_v39, 1.0  ;;  %vm758_vm14 = vcmp.gt.f32.partialorder %v1638_v39, 0.0 }
 0x135   : > { %vm1660_vm6 = vmand %vm752_vm0, %vm760_vm1  ;;  %vm754_vm0 = vcmp.gt.f32.partialorder %v1635_v38, 0.0 }
 0x136   : > { %660 = vadd.xlane.f32.xlu0 %v648_v47 }
 0x137   : > { %711 = vadd.xlane.f32.xlu1 %v698_v33 }
 0x13a   : > { %701 = vadd.xlane.f32.xlu0 %v693_v45  ;;  %v748_v45 = vld [vmem:[%s1610_s27 + $0x20] sm:$0xff] }
 0x13b   : > { %658 = vadd.xlane.f32.xlu1 %v647_v51  ;;  %vm764_vm5 = vcmp.gt.f32.partialorder %v748_v45, 0.0 }
 0x13c   : > { %v1243_v42 = vpop.eup %1242  ;;  %vm1674_vm7 = vmand %vm756_vm4, %vm764_vm5 }
 0x13d   : > { %v1245_v55 = vpop.eup %1244 }
 0x13e   : > { %709 = vadd.xlane.f32.xlu0 %v697_v48 }
 0x13f   : > { %666 = vadd.xlane.f32.xlu1 %v651_v56  ;;  %v786_v56 = vmax.f32 %v1635_v38, 1.0 }
 0x142   : > { %664 = vadd.xlane.f32.xlu0 %v650_v58 }
 0x143   : > { %707 = vadd.xlane.f32.xlu1 %v696_v52  ;;  %v643_v52 = vld [vmem:[#allocation2 + $0x38] sm:$0xff] }
 0x146   : > { %705 = vadd.xlane.f32.xlu0 %v695_v54 }
 0x147   : > { %656 = vadd.xlane.f32.xlu1 %v646_v49 }
 0x14a   : > { %713 = vadd.xlane.f32.xlu0 %v699_v59 }
 0x14b   : > { %715 = vadd.xlane.f32.xlu1 %v700_v57 }
 0x1bb   : > { %v655_v5 = vpop.xlane.xlu0 %654 }
 0x1bc   : > { %v663_v6 = vpop.xlane.xlu1 %662  ;;  %v669_v7 = vadd.f32 %v655_v5, %v637_v1 }
 0x1bd   : > { %v673_v8 = vadd.f32 %v663_v6, %v641_v2  ;;  %v642_v2 = vld [vmem:[#allocation2 + $0x30] sm:$0xff] }
 0x1be   : > { %678 = vst.msk [vmem:[#allocation2 + $0x8] sm:$0xff] %vm343_vm2, %v669_v7 }
 0x1bf   : > { %682 = vst.msk [vmem:[#allocation2 + $0x28] sm:$0xff] %vm343_vm2, %v673_v8  ;;  %v653_v13 = vpop.xlane.xlu0 %652  ;;  %v747_v8 = vld [vmem:[%s1610_s27 + $0x18] sm:$0xff] }
 0x1c0   : > { %v704_v14 = vpop.xlane.xlu1 %703  ;;  %v668_v15 = vadd.f32 %v653_v13, %v636_v9  ;;  %vm763_vm9 = vcmp.gt.f32.partialorder %v747_v8, 0.0 }
 0x1c1   : > { %v718_v17 = vadd.f32 %v704_v14, %v686_v11  ;;  %vm1693_vm10 = vmand %vm755_vm8, %vm763_vm9 }
 0x1c2   : > { %677 = vst.msk [vmem:[#allocation2] sm:$0xff] %vm343_vm2, %v668_v15 }
 0x1c3   : > { %726 = vst.msk [vmem:[#allocation3 + $0x8] sm:$0xff] %vm343_vm2, %v718_v17  ;;  %v661_v21 = vpop.xlane.xlu0 %660  ;;  %v687_v17 = vld [vmem:[#allocation3 + $0x10] sm:$0xff] }
 0x1c4   : > { %v712_v24 = vpop.xlane.xlu1 %711  ;;  %v672_v25 = vadd.f32 %v661_v21, %v640_v18  ;;  %v1247_v18 = vpop.eup %1246 }
 0x1c5   : > { %v777_v27 = vld [vmem:[#allocation2 + $0x8] sm:$0xff]  ;;  %v722_v28 = vadd.f32 %v712_v24, %v690_v19 }
 0x1c6   : > { %v781_v32 = vld [vmem:[#allocation2 + $0x28] sm:$0xff]  ;;  %v795_v34 = vmul.f32 %v1239_v20, %v777_v27  ;;  %681 = vst.msk [vmem:[#allocation2 + $0x20] sm:$0xff] %vm343_vm2, %v672_v25  ;;  %v638_v20 = vld [vmem:[#allocation2 + $0x10] sm:$0xff] }
 0x1c7   : > { %730 = vst.msk [vmem:[#allocation3 + $0x28] sm:$0xff] %vm343_vm2, %v722_v28  ;;  %v702_v37 = vpop.xlane.xlu0 %701  ;;  %v803_v43 = vmul.f32 %v1241_v30, %v781_v32  ;;  %v751_v28 = vld [vmem:[%s1610_s27 + $0x38] sm:$0xff] }
 0x1c8   : > { %v825_v33 = vsel %vm1623_vm13, %v795_v34, 1.0  ;;  %v717_v40 = vadd.f32 %v702_v37, %v685_v29  ;;  %v659_v41 = vpop.xlane.xlu1 %658  ;;  %v692_v37 = vld [vmem:[#allocation3 + $0x38] sm:$0xff]  ;;  %vm767_vm12 = vcmp.gt.f32.partialorder %v751_v28, 0.0 }
 0x1c9   : > { %v776_v47 = vld [vmem:[#allocation2] sm:$0xff]  ;;  %v671_v48 = vadd.f32 %v659_v41, %v639_v35  ;;  %1248 = vlog2.f32 %v825_v33  ;;  %v829_v61 = vsel %vm1648_vm3, %v803_v43, 1.0  ;;  %vm1718_vm4 = vmand %vm759_vm11, %vm767_vm12 }
 0x1ca   : > { %v809_v51 = vld [vmem:[#allocation3 + $0x8] sm:$0xff]  ;;  %725 = vst.msk [vmem:[#allocation3] sm:$0xff] %vm343_vm2, %v717_v40  ;;  %v793_v57 = vmul.f32 %v1243_v42, %v776_v47  ;;  %1250 = vrcp.f32 %v791_v46  ;;  %v750_v40 = vld [vmem:[%s1610_s27 + $0x30] sm:$0xff] }
 0x1cb   : > { %v817_v54 = vadd.f32 %v809_v51, %v795_v34  ;;  %680 = vst.msk [vmem:[#allocation2 + $0x18] sm:$0xff] %vm343_vm2, %v671_v48  ;;  %v710_v49 = vpop.xlane.xlu0 %709  ;;  %v691_v34 = vld [vmem:[#allocation3 + $0x30] sm:$0xff]  ;;  %vm766_vm15 = vcmp.gt.f32.partialorder %v750_v40, 0.0 }
 0x1cc   : > { %v721_v58 = vadd.f32 %v710_v49, %v689_v44  ;;  %v667_v59 = vpop.xlane.xlu1 %666  ;;  %v824_v10 = vsel %vm1660_vm6, %v793_v57, 1.0  ;;  %v746_v46 = vld [vmem:[%s1610_s27 + $0x10] sm:$0xff]  ;;  %vm1726_vm5 = vmand %vm758_vm14, %vm766_vm15 }
 0x1cd   : > { %v833_v62 = vsel %vm1623_vm13, %v817_v54, 1.0  ;;  %v780_v0 = vld [vmem:[#allocation2 + $0x20] sm:$0xff]  ;;  %v675_v1 = vadd.f32 %v667_v59, %v643_v52  ;;  %vm762_vm1 = vcmp.gt.f32.partialorder %v746_v46, 0.0 }
 0x1ce   : > { %1252 = vlog2.f32 %v833_v62  ;;  %v813_v4 = vld [vmem:[#allocation3 + $0x28] sm:$0xff]  ;;  %729 = vst.msk [vmem:[#allocation3 + $0x20] sm:$0xff] %vm343_vm2, %v721_v58  ;;  %v801_v6 = vmul.f32 %v1245_v55, %v780_v0  ;;  %vm1736_vm8 = vmand %vm754_vm0, %vm762_vm1 }
 0x1cf   : > { %1254 = vrcp.f32 %v790_v53  ;;  %v821_v5 = vadd.f32 %v813_v4, %v803_v43  ;;  %684 = vst.msk [vmem:[#allocation2 + $0x38] sm:$0xff] %vm343_vm2, %v675_v1  ;;  %v665_v7 = vpop.xlane.xlu0 %664 }
 0x1d0   : > { %1256 = vlog2.f32 %v829_v61  ;;  %v674_v11 = vadd.f32 %v665_v7, %v642_v2  ;;  %v708_v12 = vpop.xlane.xlu1 %707  ;;  %v828_v21 = vsel %vm1674_vm7, %v801_v6, 1.0 }
 0x1d1   : > { %1258 = vrcp.f32 %v786_v56  ;;  %v837_v13 = vsel %vm1648_vm3, %v821_v5, 1.0  ;;  %v808_v14 = vld [vmem:[#allocation3] sm:$0xff]  ;;  %v720_v15 = vadd.f32 %v708_v12, %v688_v63 }
 0x1d2   : > { %1260 = vlog2.f32 %v837_v13  ;;  %v816_v3 = vadd.f32 %v808_v14, %v793_v57  ;;  %v779_v19 = vld [vmem:[#allocation2 + $0x18] sm:$0xff]  ;;  %683 = vst.msk [vmem:[#allocation2 + $0x30] sm:$0xff] %vm343_vm2, %v674_v11 }
 0x1d3   : > { %1262 = vlog2.f32 %v824_v10  ;;  %728 = vst.msk [vmem:[#allocation3 + $0x18] sm:$0xff] %vm343_vm2, %v720_v15  ;;  %v706_v22 = vpop.xlane.xlu0 %705  ;;  %v1249_v27 = vpop.eup %1248  ;;  %v799_v29 = vmul.f32 %v1247_v18, %v779_v19 }
 0x1d4   : > { %v832_v23 = vsel %vm1660_vm6, %v816_v3, 1.0  ;;  %v719_v24 = vadd.f32 %v706_v22, %v687_v17  ;;  %v657_v25 = vpop.xlane.xlu1 %656  ;;  %v1251_v33 = vpop.eup %1250  ;;  %v859_v16 = vmul.f32 0.6931472, %v1249_v27 }
 0x1d5   : > { %1264 = vlog2.f32 %v832_v23  ;;  %v812_v30 = vld [vmem:[#allocation3 + $0x20] sm:$0xff]  ;;  %v670_v32 = vadd.f32 %v657_v25, %v638_v20  ;;  %v827_v52 = vsel %vm1693_vm10, %v799_v29, 1.0 }
 0x1d6   : > { %1266 = vlog2.f32 %v828_v21  ;;  %v820_v36 = vadd.f32 %v812_v30, %v801_v6  ;;  %727 = vst.msk [vmem:[#allocation3 + $0x10] sm:$0xff] %vm343_vm2, %v719_v24  ;;  %v783_v41 = vld [vmem:[#allocation2 + $0x38] sm:$0xff] }
 0x1d7   : > { %679 = vst.msk [vmem:[#allocation2 + $0x10] sm:$0xff] %vm343_vm2, %v670_v32  ;;  %v714_v42 = vpop.xlane.xlu0 %713  ;;  %v807_v55 = vmul.f32 %v1251_v33, %v783_v41 }
 0x1d8   : > { %v1253_v45 = vpop.eup %1252  ;;  %v836_v43 = vsel %vm1674_vm7, %v820_v36, 1.0  ;;  %v723_v47 = vadd.f32 %v714_v42, %v691_v34  ;;  %v716_v48 = vpop.xlane.xlu1 %715 }
 0x1d9   : > { %v1255_v44 = vpop.eup %1254  ;;  %v843_v51 = vmul.f32 0.6931472, %v1253_v45  ;;  %1268 = vlog2.f32 %v836_v43  ;;  %v782_v53 = vld [vmem:[#allocation2 + $0x30] sm:$0xff]  ;;  %v724_v54 = vadd.f32 %v716_v48, %v692_v37  ;;  %v831_v39 = vsel %vm1718_vm4, %v807_v55, 1.0 }
 0x1da   : > { %v1257_v49 = vpop.eup %1256  ;;  %v811_v56 = vld [vmem:[#allocation3 + $0x18] sm:$0xff]  ;;  %731 = vst.msk [vmem:[#allocation3 + $0x30] sm:$0xff] %vm343_vm2, %v723_v47  ;;  %1270 = vlog2.f32 %v827_v52  ;;  %v805_v0 = vmul.f32 %v1255_v44, %v782_v53 }
 0x1db   : > { %v1259_v57 = vpop.eup %1258  ;;  %v873_v59 = vsub.f32 %v843_v51, %v859_v16  ;;  %v819_v61 = vadd.f32 %v811_v56, %v799_v29  ;;  %732 = vst.msk [vmem:[#allocation3 + $0x38] sm:$0xff] %vm343_vm2, %v724_v54  ;;  %v867_v31 = vmul.f32 0.6931472, %v1257_v49 }
 0x1dc   : > { %v1261_v62 = vpop.eup %1260  ;;  %v830_v38 = vsel %vm1726_vm5, %v805_v0, 1.0 }
 0x1dd   : > { %v1263_v1 = vpop.eup %1262  ;;  %v881_v4 = vsel %vm1623_vm13, %v873_v59, 0.0  ;;  %v851_v63 = vmul.f32 0.6931472, %v1261_v62  ;;  %v835_v5 = vsel %vm1693_vm10, %v819_v61, 1.0  ;;  %v810_v14 = vld [vmem:[#allocation3 + $0x10] sm:$0xff] }
 0x1de   : > { %889 = vst.msk [vmem:[%s1712_s30 + $0x8] sm:$0xff] %vm343_vm2, %v881_v4  ;;  %1272 = vlog2.f32 %v835_v5  ;;  %v778_v7 = vld [vmem:[#allocation2 + $0x10] sm:$0xff]  ;;  %v857_v12 = vmul.f32 0.6931472, %v1263_v1 }
 0x1df   : > { %v1265_v26 = vpop.eup %1264  ;;  %v877_v8 = vsub.f32 %v851_v63, %v867_v31  ;;  %v797_v10 = vmul.f32 %v1259_v57, %v778_v7  ;;  %1274 = vlog2.f32 %v831_v39 }
 0x1e0   : > { %v1267_v11 = vpop.eup %1266  ;;  %v841_v13 = vmul.f32 0.6931472, %v1265_v26 }
 0x1e1   : > { %v885_v15 = vsel %vm1648_vm3, %v877_v8, 0.0  ;;  %v818_v17 = vadd.f32 %v810_v14, %v797_v10  ;;  %v826_v18 = vsel %vm1736_vm8, %v797_v10, 1.0  ;;  %v814_v3 = vld [vmem:[#allocation3 + $0x30] sm:$0xff]  ;;  %v865_v23 = vmul.f32 0.6931472, %v1267_v11 }
 0x1e2   : > { %893 = vst.msk [vmem:[%s1712_s30 + $0x28] sm:$0xff] %vm343_vm2, %v885_v15  ;;  %v872_v19 = vsub.f32 %v841_v13, %v857_v12  ;;  %1276 = vlog2.f32 %v826_v18  ;;  %v822_v20 = vadd.f32 %v814_v3, %v805_v0  ;;  %v815_v21 = vld [vmem:[#allocation3 + $0x38] sm:$0xff] }
 0x1e3   : > { %v1269_v22 = vpop.eup %1268  ;;  %1278 = vlog2.f32 %v830_v38  ;;  %v834_v50 = vsel %vm1736_vm8, %v818_v17, 1.0  ;;  %v823_v24 = vadd.f32 %v815_v21, %v807_v55 }
 0x1e4   : > { %v880_v25 = vsel %vm1660_vm6, %v872_v19, 0.0  ;;  %v849_v27 = vmul.f32 0.6931472, %v1269_v22  ;;  %1280 = vlog2.f32 %v834_v50  ;;  %v838_v28 = vsel %vm1726_vm5, %v822_v20, 1.0  ;;  %v1271_v30 = vpop.eup %1270 }
 0x1e5   : > { %888 = vst.msk [vmem:[%s1712_s30] sm:$0xff] %vm343_vm2, %v880_v25  ;;  %1282 = vlog2.f32 %v838_v28  ;;  %v839_v29 = vsel %vm1718_vm4, %v823_v24, 1.0  ;;  %v863_v36 = vmul.f32 0.6931472, %v1271_v30 }
 0x1e6   : > { %v876_v32 = vsub.f32 %v849_v27, %v865_v23  ;;  %1284 = vlog2.f32 %v839_v29 }
 0x1e8   : > { %v1273_v34 = vpop.eup %1272  ;;  %v884_v60 = vsel %vm1674_vm7, %v876_v32, 0.0 }
 0x1e9   : > { %892 = vst.msk [vmem:[%s1712_s30 + $0x20] sm:$0xff] %vm343_vm2, %v884_v60  ;;  %v847_v37 = vmul.f32 0.6931472, %v1273_v34  ;;  %v1275_v33 = vpop.eup %1274 }
 0x1ea   : > { %v871_v51 = vmul.f32 0.6931472, %v1275_v33 }
 0x1eb   : > { %v875_v40 = vsub.f32 %v847_v37, %v863_v36 }
 0x1ec   : > { %v1277_v41 = vpop.eup %1276 }
 0x1ed   : > { %v1279_v42 = vpop.eup %1278  ;;  %v883_v45 = vsel %vm1693_vm10, %v875_v40, 0.0  ;;  %v861_v43 = vmul.f32 0.6931472, %v1277_v41 }
 0x1ee   : > { %v1281_v46 = vpop.eup %1280  ;;  %891 = vst.msk [vmem:[%s1712_s30 + $0x18] sm:$0xff] %vm343_vm2, %v883_v45  ;;  %v869_v48 = vmul.f32 0.6931472, %v1279_v42 }
 0x1ef   : > { %v1283_v16 = vpop.eup %1282  ;;  %v845_v9 = vmul.f32 0.6931472, %v1281_v46 }
 0x1f0   : > { %v1285_v47 = vpop.eup %1284  ;;  %v853_v44 = vmul.f32 0.6931472, %v1283_v16 }
 0x1f1   : > { %v874_v52 = vsub.f32 %v845_v9, %v861_v43  ;;  %v855_v53 = vmul.f32 0.6931472, %v1285_v47 }
 0x1f2   : > { %v878_v54 = vsub.f32 %v853_v44, %v869_v48 }
 0x1f3   : > { %v882_v35 = vsel %vm1736_vm8, %v874_v52, 0.0  ;;  %v879_v49 = vsub.f32 %v855_v53, %v871_v51 }
 0x1f4   : > { %890 = vst.msk [vmem:[%s1712_s30 + $0x10] sm:$0xff] %vm343_vm2, %v882_v35  ;;  %v886_v55 = vsel %vm1726_vm5, %v878_v54, 0.0 }
 0x1f5   : > { %894 = vst.msk [vmem:[%s1712_s30 + $0x30] sm:$0xff] %vm343_vm2, %v886_v55  ;;  %v887_v56 = vsel %vm1718_vm4, %v879_v49, 0.0 }
 0x1f6   : > { %895 = vst.msk [vmem:[%s1712_s30 + $0x38] sm:$0xff] %vm343_vm2, %v887_v56 }
 0x1f7 PF: > { %s15_s20 = sadd.s32 1, %s1308_s20   ;;  %s1815_s18 = smov %s1304_s19 }
 0x1f8   : > { %p12_p6 = scmp.ge.s32.totalorder %s15_s20, 4   ;;  %s1816_s19 = smov %s1818_s21 }
 0x1fa   :  { %14 = sbr.rel (!%p12_p6) target bundleno = 2 (0x2), region = 90 }

</bundles_post_ra>
